<compile_context>
chip_gen: v6e
topology: v6e:2x2x1
jax: 0.10.0
libtpu: 0.0.40
codegen_flags: <defaults>
</compile_context>

<pallas_src>
import jax
import jax.numpy as jnp
from jax.experimental import pallas as pl
from jax.experimental.pallas import tpu as pltpu


def _normalize_kernel(x_ref, p_ref, o_ref):
    # x_ref / o_ref: (row_tile, lane_tile) tile of the flattened (N*C, H*W) image.
    # p_ref: (row_tile, 2) f32 per-row (= per (n, c)) [scale, bias].
    x = x_ref[...].astype(jnp.float32)
    p = p_ref[...]
    scale = p[:, 0:1]
    bias = p[:, 1:2]
    o_ref[...] = (x * scale + bias).astype(o_ref.dtype)


def _round_up(x, m):
    return ((x + m - 1) // m) * m


def _block_budget_bytes():
    """Per-block byte budget, picked per TPU generation (HBM-roofline driven)."""
    try:
        kind = jax.devices()[0].device_kind.lower()
    except Exception:  # pragma: no cover - fall back to a safe middle ground
        return 4 * 1024 * 1024
    if "v5 lite" in kind or "v5lite" in kind or "v5e" in kind:
        return 2 * 1024 * 1024
    if "v6" in kind:
        return 4 * 1024 * 1024
    # v7x and anything newer/unknown: fast HBM, 64 MiB physical VMEM per TC.
    return 8 * 1024 * 1024


def normalization_forward(img, mean, std):
    """(img - mean[:, None, None]) / std[:, None, None] for NCHW img."""
    N, C, H, W = img.shape
    R, L = N * C, H * W

    # Integer images promote to f32 (PyTorch would promote int - float too);
    # float images keep their dtype, math is always done in f32.
    out_dtype = img.dtype if jnp.issubdtype(img.dtype, jnp.floating) else jnp.float32

    # Metadata reshape (NCHW is contiguous): rows index (n, c), lanes index (h, w).
    x2d = img.reshape(R, L)

    # Precompute per-row [scale, bias] in f32, merged into one small input.
    mean_f32 = jnp.asarray(mean, jnp.float32).reshape(-1)
    std_f32 = jnp.asarray(std, jnp.float32).reshape(-1)
    assert mean_f32.shape == (C,) and std_f32.shape == (C,)
    inv_std = 1.0 / std_f32  # TODO(synk): no std==0 guard (same behavior as PyTorch).
    params_c = jnp.stack([inv_std, -mean_f32 * inv_std], axis=-1)  # (C, 2)
    params = jnp.tile(params_c, (N, 1))                            # (R, 2)

    itemsize = jnp.dtype(img.dtype).itemsize
    budget = _block_budget_bytes()

    # Lane tile: lane-dense (multiple of 128), never larger than needed to cover
    # L, and small enough that an 8-row block fits the budget.
    lane_full = _round_up(L, 128)
    max_lane = max(128, (budget // (8 * itemsize)) // 128 * 128)
    lane_tile = min(lane_full, max_lane)

    # Row tile: fill the remaining budget (multiple of 8), ragged edges allowed.
    row_full = _round_up(R, 8)
    max_row = max(8, (budget // (lane_tile * itemsize)) // 8 * 8)
    row_tile = min(row_full, max_row)

    grid_r = pl.cdiv(R, row_tile)
    grid_l = pl.cdiv(L, lane_tile)

    # v7x megacore balance: prefer an even number of grid steps when splitting
    # the row axis can provide it cheaply (no effect on single-block grids).
    if (grid_r * grid_l) % 2 == 1 and (grid_r * grid_l) > 1 and row_tile > 8:
        row_tile = max(8, (row_tile // 2) // 8 * 8)
        grid_r = pl.cdiv(R, row_tile)

    grid = (grid_r, grid_l)
    block_bytes = row_tile * lane_tile * itemsize
    vmem_limit = min(max(32 * 1024 * 1024, 5 * block_bytes), 48 * 1024 * 1024)

    grid_spec = pltpu.PrefetchScalarGridSpec(
        num_scalar_prefetch=0,
        grid=grid,
        in_specs=[
            pl.BlockSpec((row_tile, lane_tile), lambda i, j: (i, j)),
            # Constant across j (innermost axis) -> stays resident, no re-DMA.
            pl.BlockSpec((row_tile, 2), lambda i, j: (i, 0)),
        ],
        out_specs=pl.BlockSpec((row_tile, lane_tile), lambda i, j: (i, j)),
    )

    out2d = pl.pallas_call(
        _normalize_kernel,
        out_shape=jax.ShapeDtypeStruct((R, L), out_dtype),
        grid_spec=grid_spec,
        compiler_params=pltpu.CompilerParams(
            dimension_semantics=("parallel", "parallel"),
            vmem_limit_bytes=vmem_limit,
        ),
    )(x2d, params)

    return out2d.reshape(N, C, H, W)


if __name__ == "__main__":
    key = jax.random.PRNGKey(0)
    N, C, H, W = 2, 4, 16, 16
    img = jax.random.uniform(key, (N, C, H, W), dtype=jnp.float32)

    # Deterministic "parameters" (module __init__ args): per-channel mean/std.
    mean = jnp.array([0.485, 0.456, 0.406, 0.5], dtype=jnp.float32)
    std = jnp.array([0.229, 0.224, 0.225, 0.25], dtype=jnp.float32)

    out = normalization_forward(img, mean, std)
    out = jax.block_until_ready(out)

    # Reference check (plain JAX broadcast, mirrors PyTorch semantics).
    ref = (img - mean.reshape(-1, 1, 1)) / std.reshape(-1, 1, 1)
    assert out.shape == (N, C, H, W)
    assert out.dtype == img.dtype
    assert jnp.allclose(out, ref, atol=1e-5, rtol=1e-5)

    print("KERNEL_OK")
</pallas_src>

<mosaic_0001>
module attributes {stable_mosaic.version = 11 : i64} {
  func.func @_normalize_kernel(%arg0: i32, %arg1: i32, %arg2: memref<8x256xf32, #tpu.memory_space<vmem>>, %arg3: memref<8x2xf32, #tpu.memory_space<vmem>>, %arg4: memref<8x256xf32, #tpu.memory_space<vmem>>) attributes {dimension_semantics = [#tpu.dimension_semantics<parallel>, #tpu.dimension_semantics<parallel>], iteration_bounds = array<i64: 1, 1>, scalar_prefetch = 0 : i64, scratch_operands = 0 : i64, tpu.core_type = #tpu.core_type<tc>, window_params = [{transform_indices = @transform_0, window_bounds = array<i64: 8, 256>}, {transform_indices = @transform_1, window_bounds = array<i64: 8, 2>}, {transform_indices = @transform_2, window_bounds = array<i64: 8, 256>}]} {
    %c0 = arith.constant 0 : index
    %c0_0 = arith.constant 0 : index
    %0 = vector.load %arg2[%c0, %c0_0] : memref<8x256xf32, #tpu.memory_space<vmem>>, vector<8x256xf32>
    %c0_1 = arith.constant 0 : index
    %c0_2 = arith.constant 0 : index
    %1 = vector.load %arg3[%c0_1, %c0_2] : memref<8x2xf32, #tpu.memory_space<vmem>>, vector<8x2xf32>
    %2 = vector.extract_strided_slice %1 {offsets = [0, 0], sizes = [8, 1], strides = [1, 1]} : vector<8x2xf32> to vector<8x1xf32>
    %3 = vector.extract_strided_slice %1 {offsets = [0, 1], sizes = [8, 1], strides = [1, 1]} : vector<8x2xf32> to vector<8x1xf32>
    %4 = vector.broadcast %2 : vector<8x1xf32> to vector<8x256xf32>
    %5 = arith.mulf %0, %4 : vector<8x256xf32>
    %6 = vector.broadcast %3 : vector<8x1xf32> to vector<8x256xf32>
    %7 = arith.addf %5, %6 : vector<8x256xf32>
    %c0_3 = arith.constant 0 : index
    %c0_4 = arith.constant 0 : index
    %8 = vector.load %arg4[%c0_3, %c0_4] : memref<8x256xf32, #tpu.memory_space<vmem>>, vector<8x256xf32>
    tpu.vector_store %arg4[%c0_3, %c0_4], %7 {strides = array<i32>} : memref<8x256xf32, #tpu.memory_space<vmem>>, vector<8x256xf32>,
    return
  }
  func.func @transform_0(%arg0: i32, %arg1: i32) -> (i32, i32) {
    %c0_i32 = arith.constant 0 : i32
    return %arg0, %arg1 : i32, i32
  }
  func.func @transform_1(%arg0: i32, %arg1: i32) -> (i32, i32) {
    %c0_i32 = arith.constant 0 : i32
    %c0_i32_0 = arith.constant 0 : i32
    return %arg0, %c0_i32 : i32, i32
  }
  func.func @transform_2(%arg0: i32, %arg1: i32) -> (i32, i32) {
    %c0_i32 = arith.constant 0 : i32
    return %arg0, %arg1 : i32, i32
  }
}

</mosaic_0001>

<bundles_post_ra>
// kernel: tpu_custom_call.1
= control target key start
LH: loop header
LB: loop body
LE: loop exit
PB: predicated region body
PF: predicated region fallthrough
CT: control target
= control target key end

     0   :  { %7 = vsyncpa [#allocation3], 0  ;;  %s135_s0 = inlined_call_operand.hbm [shape: f32[8,256], index: 0, kind: input, shape index: {}]   ;;  %s136_s1 = inlined_call_operand.vmem [shape: f32[8,2], index: 1, kind: input, shape index: {}]   ;;  %s137_s2 = inlined_call_operand.hbm [shape: f32[8,256], index: 2, kind: output, shape index: {}]  }
   0x1   :  { %8 = vsyncpa [#allocation4], 0  ;;  %s107_s9 = smov [#allocation2]  }
   0x2   :  { %s15_s10 = sshll.u32 %s107_s9, 4  ;;  %s16_s10 = int_to_ptr.vmem [resolvable:$true] %s15_s10 }
   0x3   :  { %s71_s11 = scalar_lea.vmem %s16_s10, 256  ;;  %p76_p1 = scmp.lt.s32.totalorder %s16_s10, %s16_s10 }
   0x4   :  { %p72_p0 = scmp.ne.s32.totalorder %s16_s10, %s71_s11  ;;  %p77_p2 = scmp.lt.s32.totalorder %s71_s11, %s71_s11 }
   0x6   :  { %p78_p3 = por %p77_p2, %p76_p1 }
   0x8   :  { %p79_p4 = pnand %p78_p3, %p72_p0 }
   0xa   :  { %82 = shalt.err (!%p79_p4)
}
   0xb   :  { %18 = dma.hbm_to_vmem [thread:$0]  %s135_s0, 256, %s16_s10, [#allocation3]  }
   0xc   :  { %103 = dma.done.wait [#allocation3], 256  }
   0xd   :  { %104 = vsyncadd [#allocation3], 4294967040  ;;  %v108_v0 = vmov 0   ;;  %v26_v1 = vld [vmem:[%s136_s1] sm:$0xff]  ;;  %v109_v2 = vmov 1   ;;  %v25_v5 = vld [vmem:[#allocation2 + $0x8] sm:$0xff] }
   0xe   :  { %61 = vset.pattern.permute.xlu0 %v108_v0  ;;  %v24_v4 = vld [vmem:[#allocation2] sm:$0xff]  ;;  %s110_s16 = smov [#allocation5]  }
   0xf   :  { %29 = vperm.xlu0 %61, %v26_v1   ;;  %s48_s17 = sshll.u32 %s110_s16, 4  ;;  %s49_s17 = int_to_ptr.vmem [resolvable:$true] %s48_s17 }
  0x10   :  { %s83_s0 = scalar_lea.vmem %s49_s17, 256  ;;  %p88_p6 = scmp.lt.s32.totalorder %s49_s17, %s49_s17 }
  0x11   :  { %p84_p5 = scmp.ne.s32.totalorder %s49_s17, %s83_s0  ;;  %p89_p7 = scmp.lt.s32.totalorder %s83_s0, %s83_s0 }
  0x13   :  { %62 = vset.pattern.permute.xlu0 %v109_v2  ;;  %p90_p8 = por %p89_p7, %p88_p6 }
  0x14   :  { %35 = vperm.xlu0 %62, %v26_v1  }
  0x15   :  { %p91_p9 = pnand %p90_p8, %p84_p5 }
  0x8a   :  { %v30_v3 = vpop.permute.xlu0 %29 }
  0x8b   :  { %v32_v6 = vmul.f32 %v30_v3, %v24_v4  ;;  %v33_v7 = vmul.f32 %v30_v3, %v25_v5 }
  0x8f   :  { %v36_v8 = vpop.permute.xlu0 %35 }
  0x90   :  { %v38_v9 = vadd.f32 %v36_v8, %v32_v6  ;;  %v39_v10 = vadd.f32 %v36_v8, %v33_v7 }
  0x92   :  { %40 = vst [vmem:[#allocation5] sm:$0xff] %v38_v9  ;;  %41 = vst [vmem:[#allocation5 + $0x8] sm:$0xff] %v39_v10 }
  0x93   :  { %94 = shalt.err (!%p91_p9)
}
  0x94   :  { %51 = dma.vmem_to_hbm [thread:$0]  %s49_s17, 256, %s137_s2, [#allocation4]  }
  0x95   :  { %105 = dma.done.wait [#allocation4], 256  }
  0x96   :  { %106 = vsyncadd [#allocation4], 4294967040 }
  0x97   :  { %55 = vsyncpa [#allocation3], 1 }
  0x98   :  { %56 = vsyncpa [#allocation4], 1 }

</bundles_post_ra>
